<compile_context>
chip_gen: v7x
topology: tpu7x:2x2x1
jax: 0.10.0
libtpu: 0.0.40
codegen_flags: <defaults>
</compile_context>

<pallas_src>
import math
import functools

import jax
import jax.numpy as jnp
from jax import lax
from jax.experimental import pallas as pl
from jax.experimental.pallas import tpu as pltpu


def _qkv_attn_kernel(q_ref, k_ref, v_ref, out_ref):
    """One (batch*head, q-tile) step of legacy QKV attention.

    q_ref   : (1, ch, tq)   query rows for this q tile
    k_ref   : (1, ch, T)    all keys for this head
    v_ref   : (1, ch, T)    all values for this head
    out_ref : (1, ch, tq)
    """
    q = q_ref[0]            # (ch, tq)  input dtype
    k = k_ref[0]            # (ch, T)
    v = v_ref[0]            # (ch, T)
    ch = q.shape[0]

    # Fold both fourth-root scales into one 1/sqrt(ch) on q (f32 accumulation
    # makes this mathematically identical to scaling q and k separately).
    qs = q * (1.0 / math.sqrt(ch))                      # stays in input dtype

    # scores[s, t] = sum_c k[c, s] * qs[c, t]   -- contraction over ch stated
    # directly; no transpose materialized.  f32 accumulation on the MXU.
    scores = lax.dot_general(
        k, qs, (((0,), (0,)), ((), ())),
        preferred_element_type=jnp.float32)             # (T, tq) f32

    # Softmax over the kv axis (axis 0), computed in f32, normalization
    # deferred until after the second matmul.
    m = jnp.max(scores, axis=0, keepdims=True)          # (1, tq)
    e = jnp.exp(scores - m)                             # (T, tq) f32
    l = jnp.sum(e, axis=0, keepdims=True)               # (1, tq)

    # Cast un-normalized weights to the input dtype (matches the reference's
    # .type(weight.dtype)) so the second matmul runs at native MXU rate.
    p = e.astype(v.dtype)                               # (T, tq)

    # a_unnorm[c, t] = sum_s v[c, s] * p[s, t]  -- natural MXU orientation.
    acc = jnp.dot(v, p, preferred_element_type=jnp.float32)   # (ch, tq) f32

    # Deferred normalization: O(ch*tq) multiplies, reciprocal on the EUP.
    inv_l = pl.reciprocal(l, approx=True)               # (1, tq)
    out_ref[0] = (acc * inv_l).astype(out_ref.dtype)


def _pick_q_tile(length, target):
    """Largest q tile <= target that divides `length` and is a multiple of
    128; falls back to the full length (block == full dim is always legal)."""
    if length <= target:
        return length
    t = (target // 128) * 128
    while t >= 128:
        if length % t == 0:
            return t
        t -= 128
    return length


def qkv_attention_legacy(qkv, n_heads, *, q_tile_target=256):
    """qkv: [N, H*3*C, T]  ->  [N, H*C, T]   (matches QKVAttentionLegacy)."""
    bs, width, length = qkv.shape
    assert width % (3 * n_heads) == 0
    ch = width // (3 * n_heads)
    b = bs * n_heads

    qkv_r = qkv.reshape(b, 3 * ch, length)

    tq = _pick_q_tile(length, q_tile_target)
    num_q = length // tq

    # qkv is passed three times; the channel-axis block index (0/1/2) selects
    # the q / k / v rows of each head.  q and out are additionally tiled along
    # the (lane) sequence axis; k/v block indices depend only on the head, so
    # the pipeline does not re-fetch them across q tiles.
    q_spec = pl.BlockSpec((1, ch, tq), lambda i, j: (i, 0, j))
    k_spec = pl.BlockSpec((1, ch, length), lambda i, j: (i, 1, 0))
    v_spec = pl.BlockSpec((1, ch, length), lambda i, j: (i, 2, 0))
    o_spec = pl.BlockSpec((1, ch, tq), lambda i, j: (i, 0, j))

    out = pl.pallas_call(
        _qkv_attn_kernel,
        out_shape=jax.ShapeDtypeStruct((b, ch, length), qkv.dtype),
        grid=(b, num_q),
        in_specs=[q_spec, k_spec, v_spec],
        out_specs=o_spec,
        compiler_params=pltpu.CompilerParams(
            dimension_semantics=("parallel", "parallel"),
            vmem_limit_bytes=48 * 1024 * 1024,
        ),
    )(qkv_r, qkv_r, qkv_r)

    return out.reshape(bs, n_heads * ch, length)


def _reference(qkv, n_heads):
    """Pure-JAX transcription of the PyTorch forward, for a sanity check."""
    bs, width, length = qkv.shape
    ch = width // (3 * n_heads)
    qkv_r = qkv.reshape(bs * n_heads, 3 * ch, length)
    q, k, v = qkv_r[:, 0:ch], qkv_r[:, ch:2 * ch], qkv_r[:, 2 * ch:]
    scale = 1.0 / math.sqrt(math.sqrt(ch))
    weight = jnp.einsum('bct,bcs->bts', q * scale, k * scale)
    weight = jax.nn.softmax(weight.astype(jnp.float32), axis=-1).astype(qkv.dtype)
    a = jnp.einsum('bts,bcs->bct', weight, v)
    return a.reshape(bs, -1, length)


if __name__ == "__main__":
    key = jax.random.PRNGKey(0)

    # --- small f32 case consistent with the module: N=2, H=4, C=8, T=16 ---
    n_heads = 4
    bs, ch, length = 2, 8, 16
    width = n_heads * 3 * ch  # 96
    k0, k1 = jax.random.split(key)
    qkv = jax.random.normal(k0, (bs, width, length), dtype=jnp.float32)

    out = jax.block_until_ready(qkv_attention_legacy(qkv, n_heads))
    ref = _reference(qkv, n_heads)
    assert out.shape == (bs, n_heads * ch, length)
    assert jnp.allclose(out, ref, atol=5e-3, rtol=5e-3), float(
        jnp.max(jnp.abs(out.astype(jnp.float32) - ref.astype(jnp.float32))))

    # --- small bf16 case exercising the bf16 MXU path and q-tiling ---
    n_heads_b, bs_b, ch_b, length_b = 2, 1, 16, 256
    width_b = n_heads_b * 3 * ch_b
    qkv_b = jax.random.normal(k1, (bs_b, width_b, length_b),
                              dtype=jnp.bfloat16)
    out_b = jax.block_until_ready(
        qkv_attention_legacy(qkv_b, n_heads_b, q_tile_target=128))
    ref_b = _reference(qkv_b, n_heads_b)
    assert out_b.shape == (bs_b, n_heads_b * ch_b, length_b)
    assert jnp.allclose(out_b.astype(jnp.float32), ref_b.astype(jnp.float32),
                        atol=5e-2, rtol=5e-2)

    print("KERNEL_OK")
</pallas_src>

<mosaic_0001>
module attributes {stable_mosaic.version = 11 : i64} {
  func.func @_qkv_attn_kernel(%arg0: i32, %arg1: i32, %arg2: memref<1x8x16xf32, #tpu.memory_space<vmem>>, %arg3: memref<1x8x16xf32, #tpu.memory_space<vmem>>, %arg4: memref<1x8x16xf32, #tpu.memory_space<vmem>>, %arg5: memref<1x8x16xf32, #tpu.memory_space<vmem>>) attributes {dimension_semantics = [#tpu.dimension_semantics<parallel>, #tpu.dimension_semantics<parallel>], iteration_bounds = array<i64: 8, 1>, scalar_prefetch = 0 : i64, scratch_operands = 0 : i64, tpu.core_type = #tpu.core_type<tc>, window_params = [{transform_indices = @transform_0, window_bounds = array<i64: 1, 8, 16>}, {transform_indices = @transform_1, window_bounds = array<i64: 1, 8, 16>}, {transform_indices = @transform_2, window_bounds = array<i64: 1, 8, 16>}, {transform_indices = @transform_3, window_bounds = array<i64: 1, 8, 16>}]} {
    %c0 = arith.constant 0 : index
    %c0_0 = arith.constant 0 : index
    %c0_1 = arith.constant 0 : index
    %0 = vector.load %arg2[%c0, %c0_0, %c0_1] : memref<1x8x16xf32, #tpu.memory_space<vmem>>, vector<1x8x16xf32>
    %1 = vector.shape_cast %0 : vector<1x8x16xf32> to vector<8x16xf32>
    %c0_2 = arith.constant 0 : index
    %c0_3 = arith.constant 0 : index
    %c0_4 = arith.constant 0 : index
    %2 = vector.load %arg3[%c0_2, %c0_3, %c0_4] : memref<1x8x16xf32, #tpu.memory_space<vmem>>, vector<1x8x16xf32>
    %3 = vector.shape_cast %2 : vector<1x8x16xf32> to vector<8x16xf32>
    %c0_5 = arith.constant 0 : index
    %c0_6 = arith.constant 0 : index
    %c0_7 = arith.constant 0 : index
    %4 = vector.load %arg4[%c0_5, %c0_6, %c0_7] : memref<1x8x16xf32, #tpu.memory_space<vmem>>, vector<1x8x16xf32>
    %5 = vector.shape_cast %4 : vector<1x8x16xf32> to vector<8x16xf32>
    %cst = arith.constant 0.353553385 : f32
    %6 = vector.broadcast %cst : f32 to vector<8x16xf32>
    %7 = arith.mulf %1, %6 : vector<8x16xf32>
    %cst_8 = arith.constant dense<0.000000e+00> : vector<16x16xf32>
    %8 = tpu.matmul %3, %7, %cst_8 {dimension_numbers = #tpu.dot_dimension_numbers<[0], [0], [1], [1], [0, 1, 1, 1], [], []>} : vector<8x16xf32>, vector<8x16xf32>, vector<16x16xf32> -> vector<16x16xf32>
    %cst_9 = arith.constant dense<0xFF800000> : vector<16xf32>
    %9 = vector.multi_reduction <maximumf>, %8, %cst_9 [0] : vector<16x16xf32> to vector<16xf32>
    %10 = vector.shape_cast %9 : vector<16xf32> to vector<1x16xf32>
    %11 = vector.broadcast %10 : vector<1x16xf32> to vector<16x16xf32>
    %12 = arith.subf %8, %11 : vector<16x16xf32>
    %13 = math.exp %12 : vector<16x16xf32>
    %cst_10 = arith.constant dense<0.000000e+00> : vector<16xf32>
    %14 = vector.multi_reduction <add>, %13, %cst_10 [0] : vector<16x16xf32> to vector<16xf32>
    %15 = vector.shape_cast %14 : vector<16xf32> to vector<1x16xf32>
    %cst_11 = arith.constant dense<0.000000e+00> : vector<8x16xf32>
    %16 = tpu.matmul %5, %13, %cst_11 {dimension_numbers = #tpu.dot_dimension_numbers<[1], [0], [0], [1], [0, 0, 1, 1], [], []>} : vector<8x16xf32>, vector<16x16xf32>, vector<8x16xf32> -> vector<8x16xf32>
    %17 = tpu.reciprocal %15 {approx = true} : vector<1x16xf32> -> vector<1x16xf32>
    %18 = vector.broadcast %17 : vector<1x16xf32> to vector<8x16xf32>
    %19 = arith.mulf %16, %18 : vector<8x16xf32>
    %c0_12 = arith.constant 0 : index
    %c0_13 = arith.constant 0 : index
    %c0_14 = arith.constant 0 : index
    %20 = vector.load %arg5[%c0_12, %c0_13, %c0_14] : memref<1x8x16xf32, #tpu.memory_space<vmem>>, vector<1x8x16xf32>
    %21 = vector.shape_cast %20 : vector<1x8x16xf32> to vector<8x16xf32>
    %22 = vector.shape_cast %19 : vector<8x16xf32> to vector<1x8x16xf32>
    tpu.vector_store %arg5[%c0_12, %c0_13, %c0_14], %22 {strides = array<i32>} : memref<1x8x16xf32, #tpu.memory_space<vmem>>, vector<1x8x16xf32>,
    return
  }
  func.func @transform_0(%arg0: i32, %arg1: i32) -> (i32, i32, i32) {
    %c0_i32 = arith.constant 0 : i32
    %c0_i32_0 = arith.constant 0 : i32
    return %arg0, %c0_i32, %arg1 : i32, i32, i32
  }
  func.func @transform_1(%arg0: i32, %arg1: i32) -> (i32, i32, i32) {
    %c1_i32 = arith.constant 1 : i32
    %c0_i32 = arith.constant 0 : i32
    %c0_i32_0 = arith.constant 0 : i32
    return %arg0, %c1_i32, %c0_i32 : i32, i32, i32
  }
  func.func @transform_2(%arg0: i32, %arg1: i32) -> (i32, i32, i32) {
    %c2_i32 = arith.constant 2 : i32
    %c0_i32 = arith.constant 0 : i32
    %c0_i32_0 = arith.constant 0 : i32
    return %arg0, %c2_i32, %c0_i32 : i32, i32, i32
  }
  func.func @transform_3(%arg0: i32, %arg1: i32) -> (i32, i32, i32) {
    %c0_i32 = arith.constant 0 : i32
    %c0_i32_0 = arith.constant 0 : i32
    return %arg0, %c0_i32, %arg1 : i32, i32, i32
  }
}

</mosaic_0001>

<bundles_post_ra>
// kernel: tpu_custom_call.1
= control target key start
LH: loop header
LB: loop body
LE: loop exit
PB: predicated region body
PF: predicated region fallthrough
CT: control target
= control target key end

     0   :  { %8 = vsyncpa [#allocation3], 0  ;;  %s921_s0 = inlined_call_operand.vmem [shape: f32[8,24,16], index: 0, kind: input, shape index: {}]   ;;  %s922_s1 = inlined_call_operand.vmem [shape: f32[8,24,16], index: 1, kind: input, shape index: {}]   ;;  %s923_s2 = inlined_call_operand.vmem [shape: f32[8,24,16], index: 2, kind: input, shape index: {}]   ;;  %s924_s3 = inlined_call_operand.hbm [shape: f32[8,8,16], index: 3, kind: output, shape index: {}]  }
   0x1   :  { %10 = vsyncpa [#allocation3 + $0x1], 0  ;;  %s792_s12 = smov 0   ;;  %s794_s13 = smov 0  }
   0x2   :  { %s796_s14 = smov 0   ;;  %s798_s15 = smov 0  }
   0x3   :  { %s800_s16 = smov 0   ;;  %s802_s17 = smov 0  }
   0x4 LB: > { %s584_s18 = sadd.s32 4294967295, %s766_s17   ;;  %s585_s19 = sadd.s32 4294967294, %s766_s17   ;;  %s766_s17 = sphi %s802_s17, %s16_s17   ;;  %s762_s16 = sphi %s800_s16, %s931_s16   ;;  %s758_s15 = sphi %s798_s15, %s930_s15   ;;  %s754_s14 = sphi %s796_s14, %s929_s14   ;;  %s750_s13 = sphi %s794_s13, %s928_s13   ;;  %s746_s12 = sphi %s792_s12, %s927_s12  }
   0x5   : > { %s28_s20 = sadd.s32 1, %s762_s16  ;;  %s117_s21 = sadd.s32 1, %s754_s14 }
   0x6   : > { %p30_p0 = scmp.ge.s32.totalorder %s28_s20, 8  ;;  %p127_p1 = scmp.ne.s32.totalorder %s754_s14, %s750_s13 }
   0x7   : > { %p128_p2 = scmp.eq.s32.totalorder %s584_s18, 7  ;;  %p133_p3 = scmp.ne.s32.totalorder %s750_s13, %s746_s12 }
   0x8   : > { %s933_s20 = smov (%p30_p0, %s28_s20), 0  ;;  %p134_p5 = scmp.eq.s32.totalorder %s585_s19, 7 }
   0x9   : > { %p832_p4 = por %p128_p2, %p127_p1  ;;  %s112_s23 = ssub.s32 %s762_s16, %s933_s20 }
   0xa   : > { %p588_p6 = scmp.ge.s32.totalorder %s766_s17, 1  ;;  %p115_p7 = scmp.eq.s32.totalorder %s112_s23, 0 }
   0xb   : > { %p839_p8 = por %p134_p5, %p133_p3  ;;  %p181_p9 = scmp.lt.s32.totalorder %s766_s17, 9 }
   0xc   : > { %s845_s25 = scalar_select %p115_p7, %s754_s14, %s117_s21  }
   0xd   : > { %p182_p10 = pnand %p588_p6, %p181_p9 }
   0xe   : > { %p220_p11 = scmp.lt.s32.totalorder (!%p182_p10), %s758_s15, 7  ;;  %vm276_vm0 = vcmask (!%p182_p10), 64512   ;;  %v768_v5 = vmov (!%p182_p10), 0.0|0.0   ;;  %vm769_vm1 = vmmov (!%p182_p10), 0   ;;  %v770_v6 = vmov (!%p182_p10), 0.0   ;;  %s217_s10 = sand.u32 (!%p182_p10), 1, %s750_s13  }
   0xf   : > { %185 = sbr.rel (%p182_p10) target bundleno = 638 (0x27e), region = 32  ;;  %620 = vmatprep.subr.bf16.mxu1 (!%p182_p10), %v768_v5  ;;  %617 = vmatprep.mubr.msk.f32.mxu1 (!%p182_p10), %vm769_vm1, %v770_v6  ;;  %vm358_vm2 = vcmask (!%p182_p10), 130048   ;;  %s589_s11 = sshll.u32 (!%p182_p10), %s217_s10, 3 }
  0x10   : > { %s599_s18 = sshll.u32 (!%p182_p10), %s758_s15, 7  ;;  %s219_s19 = scalar_lea.vmem (!%p182_p10), [#allocation2], %s589_s11 }
  0x11   : > { %s474_s21 = sshll.u32 (!%p182_p10), %s219_s19, 4  ;;  %s460_s28 = scalar_lea.sflag (!%p182_p10), [#allocation3], %s217_s10  ;;  %s875_s21 = int_to_ptr.vmem [resolvable:$true] %s474_s21 }
  0x12   : > { %s771_s29 = smov (!%p182_p10), [#allocation2]  }
  0x16   : > { %s221_s26 = scalar_select %p220_p11, %s758_s15, 7 }
  0x17   : > { %s688_s15 = scalar_lea.vmem %s875_s21, 128 }
  0x18   : > { %s849_s27 = smul.u32 24, %s221_s26  ;;  %p689_p12 = scmp.ne.s32.totalorder %s875_s21, %s688_s15 }
  0x1a   : > { %s528_s30 = scalar_lea.vmem %s922_s1, %s849_s27  ;;  %s227_s6 = scalar_lea.vmem %s921_s0, %s849_s27 }
  0x1b   : > { %v593_v0 = vld [vmem:[%s528_s30 + $0x8] sm:$0xff]  ;;  %v240_v1 = vld [vmem:[%s227_s6] sm:$0xff]  ;;  %s532_s9 = scalar_lea.vmem %s923_s2, %s849_s27  ;;  %s873_s27 = scalar_lea.hbm %s924_s3, %s599_s18 }
  0x1c   : > { %244 = vxpose.xlu0.b32.start.end [1/1] (short) (narrow) %v593_v0, 16  ;;  %v243_v2 = vmul.f32 0.35355338, %v240_v1  ;;  %v594_v28 = vld [vmem:[%s532_s9 + $0x10] sm:$0xff]  ;;  %p690_p13 = pnand %p689_p12, %p832_p4  ;;  %s692_s30 = sshll.u32 %s771_s29, 4  ;;  %s693_s30 = int_to_ptr.vmem [resolvable:$false] %s692_s30 }
  0x1d   : > { %s694_s4 = scalar_lea.vmem %s693_s30, 256  ;;  %p695_p1 = scmp.lt.s32.totalorder %s875_s21, %s693_s30 }
  0x1e   : > { %608 = vmatprep.subr.mxu0 %v243_v2  ;;  %p691_p0 = pneg %p690_p13  ;;  %p696_p2 = scmp.lt.s32.totalorder %s694_s4, %s688_s15 }
  0x1f   : > { %609 = vmatpush3.msra.mxu0 %v243_v2 }
  0x20   : > { %p697_p3 = por %p696_p2, %p695_p1 }
  0x22   : > { %p698_p5 = pnand %p697_p3, %p691_p0 }
  0x9c   : > { %v260_v3 = vpop.trf.xlu0 }
  0x9d   : > { %610 = vmatprep.mubr.msk.f32.mxu0 %vm276_vm0, %v260_v3 }
  0xa0   : > { %v261_v4 = vpop.trf.xlu0 }
  0xa1   : > { %611 = vmatmul.mubr.msk.f32.vlgmr.msra.gmra.mrb[0].mxu0 %vm276_vm0, %v261_v4 }
 0x174   : > { %v612_v7 = vpop.f32.mrb[0].mxu0 }
 0x175   : > { %v360_v8 = vsel %vm358_vm2, %v612_v7, -inf  ;;  %v349_v9 = vpop.f32.mrb[1].mxu0 }
 0x176   : > { %v359_v10 = vsel %vm358_vm2, %v349_v9, -inf }
 0x177   : > { %v361_v11 = vmax.f32 %v359_v10, %v360_v8 }
 0x179   : > { %v362_v12 = vrot.slane %v361_v11, 4 }
 0x17b   : > { %v363_v13 = vmax.f32 %v361_v11, %v362_v12 }
 0x17d   : > { %v364_v14 = vrot.slane %v363_v13, 2 }
 0x17f   : > { %v365_v15 = vmax.f32 %v363_v13, %v364_v14 }
 0x181   : > { %v366_v16 = vrot.slane %v365_v15, 1 }
 0x183   : > { %v367_v17 = vmax.f32 %v365_v15, %v366_v16 }
 0x185   : > { %v368_v18 = vsub.f32 %v349_v9, %v367_v17  ;;  %v369_v19 = vsub.f32 %v612_v7, %v367_v17 }
 0x187   : > { %v370_v20 = vmul.f32 1.442695, %v368_v18  ;;  %v372_v21 = vmul.f32 1.442695, %v369_v19 }
 0x189   : > { %682 = vpow2.f32 %v370_v20 }
 0x18a   : > { %684 = vpow2.f32 %v372_v21 }
 0x193   : > { %v683_v22 = vpop.eup %682 }
 0x194   : > { %v685_v23 = vpop.eup %684  ;;  %v374_v24 = vsel %vm358_vm2, %v683_v22, 0.0 }
 0x195   : > { %v375_v25 = vsel %vm358_vm2, %v685_v23, 0.0  ;;  %v621_v26 = vpack.c.bf16 %v685_v23, %v683_v22 }
 0x196   : > { %v376_v27 = vadd.f32 %v375_v25, %v374_v24 }
 0x197   : > { %622 = vmatpush3.bf16.msra.mxu1 %v621_v26 }
 0x198   : > { %v377_v29 = vrot.slane %v376_v27, 4 }
 0x19a   : > { %618 = vmatmul.mubr.msk.f32.vlgmr.msra.gmra.mrb[0].mxu1 %vm358_vm2, %v594_v28  ;;  %v378_v30 = vadd.f32 %v377_v29, %v376_v27 }
 0x19c   : > { %v379_v31 = vrot.slane %v378_v30, 2 }
 0x19e   : > { %v380_v32 = vadd.f32 %v379_v31, %v378_v30 }
 0x1a0   : > { %v381_v33 = vrot.slane %v380_v32, 1 }
 0x1a2   : > { %v382_v34 = vadd.f32 %v381_v33, %v380_v32 }
 0x1a4   : > { %686 = vrcp.f32 %v382_v34 }
 0x1ae   : > { %v687_v35 = vpop.eup %686 }
 0x26d   : > { %v452_v36 = vpop.f32.mrb[0].mxu1 }
 0x26e   : > { %v457_v37 = vmul.f32 %v687_v35, %v452_v36  ;;  %v619_v38 = vpop.f32.mrb[1].mxu1 }
 0x270   : > { %458 = vst.msk [vmem:[%s219_s19] sm:$0xff] %vm358_vm2, %v457_v37 }
 0x271   : > { %701 = shalt.err (!%p698_p5)
}
 0x272   : > { %s702_s5 = scalar_lea.hbm %s873_s27, 128  ;;  %s706_s8 = scalar_lea.hbm %s924_s3, 1024 }
 0x273   : > { %p703_p6 = scmp.ne.s32.totalorder %s873_s27, %s702_s5  ;;  %p707_p10 = scmp.lt.u32.totalorder %s873_s27, %s924_s3 }
 0x274   : > { %p708_p11 = scmp.lt.u32.totalorder %s706_s8, %s702_s5  ;;  %p710_p13 = scmp.lt.u32.totalorder %s702_s5, %s873_s27 }
 0x275   : > { %p704_p7 = pnand %p703_p6, %p832_p4 }
 0x276   : > { %p709_p12 = por %p708_p11, %p707_p10 }
 0x277   : > { %p705_p9 = pneg %p704_p7 }
 0x278   : > { %p711_p0 = por %p710_p13, %p709_p12 }
 0x27a   : > { %p712_p1 = pnand %p711_p0, %p705_p9 }
 0x27c   : > { %715 = shalt.err (!%p712_p1)
}
 0x27d   : > { %624 = dma.vmem_to_hbm [thread:$0]  (%p832_p4), %s875_s21, 128, %s873_s27, %s460_s28  }
 0x27e PF: > { %p630_p2 = scmp.ge.s32.totalorder %s766_s17, 2  ;;  %s486_s11 = sand.u32 1, %s746_s12  }
 0x27f   : > { %s487_s18 = scalar_lea.sflag [#allocation3], %s486_s11 }
 0x280   : > { %p627_p3 = pnand %p630_p2, %p839_p8 }
 0x282   : > { %741 = dma.done.wait (!%p627_p3), %s487_s18, 128  }
 0x283   : > { %743 = vsyncadd (!%p627_p3), %s487_s18, 4294967168  ;;  %s16_s17 = sadd.s32 1, %s766_s17   ;;  %s927_s12 = smov %s750_s13 }
 0x284   : > { %p13_p5 = scmp.ge.s32.totalorder %s16_s17, 10   ;;  %s928_s13 = smov %s754_s14 }
 0x285   : > { %s929_s14 = smov %s845_s25  ;;  %s930_s15 = smov %s762_s16 }
 0x286   : > { %s931_s16 = smov %s933_s20  ;;  %15 = sbr.rel (!%p13_p5) target bundleno = 4 (0x4), region = 73 }
 0x28d   :  { %492 = vsyncpa [#allocation3], 1 }
 0x28e   :  { %494 = vsyncpa [#allocation3 + $0x1], 1 }

</bundles_post_ra>
